<compile_context>
chip_gen: v5e
topology: v5e:2x2
jax: 0.10.0
libtpu: 0.0.40
codegen_flags: <defaults>
</compile_context>

<pallas_src>
import functools

import jax
import jax.numpy as jnp
import numpy as np
from jax.experimental import pallas as pl
from jax.experimental.pallas import tpu as pltpu


# ----------------------------------------------------------------------------
# helpers
# ----------------------------------------------------------------------------
def _round_up(x, m):
    return (x + m - 1) // m * m


def _vmem_capacity_bytes():
    """Physical VMEM per core; conservative (v7x-sized) fallback if unavailable."""
    try:
        cap = int(getattr(pltpu.get_tpu_info(), "vmem_capacity_bytes", 0))
        if cap > 0:
            return cap
    except Exception:
        pass
    return 64 << 20


def _bn_scale_shift(bn, eps=1e-5):
    """Fold eval-mode BatchNorm2d into per-channel scale/shift (f32)."""
    scale = bn["gamma"] / jnp.sqrt(bn["var"] + eps)
    shift = bn["beta"] - bn["mean"] * scale
    return scale, shift


def _pad_vec(v, n, fill=0.0):
    return jnp.pad(v, (0, n - v.shape[0]), constant_values=fill)


# ----------------------------------------------------------------------------
# Kernel 1: tiled (1x1-conv == matmul) + affine + optional ReLU
# ----------------------------------------------------------------------------
def _matmul_affine_kernel(x_ref, w_ref, scale_ref, shift_ref, o_ref, *, relu):
    # x_ref: (TM, Cin)  w_ref: (Cin, Cout)  scale/shift: (1, Cout) f32
    y = jnp.dot(x_ref[...], w_ref[...], preferred_element_type=jnp.float32)
    y = y * scale_ref[...] + shift_ref[...]
    if relu:
        y = jnp.maximum(y, 0.0)
    o_ref[...] = y.astype(o_ref.dtype)


def conv1x1_affine(x2d, w, scale, shift, *, relu, tile_m=1024, out_dtype=None):
    """1x1 conv over flattened pixels, fused affine (+ReLU), tiled over rows."""
    M, Cin = x2d.shape
    Cout = w.shape[1]
    out_dtype = out_dtype if out_dtype is not None else x2d.dtype
    cap = _vmem_capacity_bytes()

    in_itm = jnp.dtype(x2d.dtype).itemsize
    w_itm = jnp.dtype(w.dtype).itemsize
    out_itm = jnp.dtype(out_dtype).itemsize

    tm = _round_up(min(int(tile_m), _round_up(max(M, 1), 8)), 8)

    def est(t):  # double-buffered blocks + temps (counted once)
        return (2 * t * Cin * in_itm + 2 * Cin * Cout * w_itm
                + 2 * t * Cout * out_itm + t * Cout * 4 + 4 * Cout * 4)

    while tm > 256 and est(tm) > int(0.6 * cap):
        tm //= 2

    Mp = _round_up(M, tm)
    if Mp != M:
        x2d = jnp.pad(x2d, ((0, Mp - M), (0, 0)))

    vmem = min(max(int(1.25 * est(tm)), 16 << 20), int(0.9 * cap))

    out = pl.pallas_call(
        functools.partial(_matmul_affine_kernel, relu=relu),
        out_shape=jax.ShapeDtypeStruct((Mp, Cout), out_dtype),
        grid=(Mp // tm,),
        in_specs=[
            pl.BlockSpec((tm, Cin), lambda i: (i, 0)),
            pl.BlockSpec((Cin, Cout), lambda i: (0, 0)),
            pl.BlockSpec((1, Cout), lambda i: (0, 0)),
            pl.BlockSpec((1, Cout), lambda i: (0, 0)),
        ],
        out_specs=pl.BlockSpec((tm, Cout), lambda i: (i, 0)),
        compiler_params=pltpu.CompilerParams(
            dimension_semantics=("parallel",),
            vmem_limit_bytes=vmem),
    )(x2d, w,
      scale.reshape(1, -1).astype(jnp.float32),
      shift.reshape(1, -1).astype(jnp.float32))
    return out[:M] if Mp != M else out


# ----------------------------------------------------------------------------
# Kernel 2: 3x3 (dilated) conv + folded BN + ReLU
#   strip-fetched, double-buffered halo DMA, dx-fused taps, VMEM f32 accumulator
# ----------------------------------------------------------------------------
def _conv3x3_vmem_need(TH, W, Cin, Cout, d, in_itm, w_itm, out_itm):
    Wp = W + 2 * d
    rows = 3 * TH if TH <= d else TH + 2 * d           # strips vs contiguous halo
    xbuf = 2 * rows * Wp * Cin * in_itm                # two DMA slots
    wbuf = 9 * Cin * Cout * w_itm                      # single-buffered weights
    acc = TH * W * Cout * 4                            # f32 accumulator scratch
    outb = 2 * TH * W * Cout * out_itm                 # pipelined output block
    patch = 2 * TH * W * 3 * Cin * in_itm              # dx-fused patch temporaries
    z = TH * W * Cout * 4                              # matmul result temp
    return xbuf + wbuf + acc + outb + patch + z + 8 * Cout * 4


def _pick_row_tile(H, W, Cin, Cout, d_list, in_itm, w_itm, out_itm, budget, target):
    """Largest multiple-of-8 row tile <= target whose working set fits the budget."""
    if H < 8:
        return H                                       # single full-height tile
    hi = min(_round_up(max(target, 8), 8), _round_up(H, 8))
    for t in range(hi, 7, -8):
        need = max(_conv3x3_vmem_need(t, W, Cin, Cout, d, in_itm, w_itm, out_itm)
                   for d in d_list)
        if need <= budget:
            return t
    # TODO(synk): if even TH=8 overflows (huge Cin + f32), add an in-kernel Cin-chunk
    # loop streaming strip/weight slices instead of failing at compile time.
    return 8


def _conv3x3_kernel(xp_hbm, w_hbm, scale_ref, shift_ref, o_ref,
                    w_vmem, xbuf, acc_ref, sems,
                    *, TH, W, Wp, Cin, d, Htot, off, strips):
    # xp_hbm : (N*Htot, Wtot, Cin) zero-padded input (pad >= d), resident in HBM.
    # w_hbm  : (3, 3*Cin, Cout) packed weights, resident in HBM.
    # o_ref  : (TH*W, Cout) lane/sublane-dense output slab.
    # xbuf   : (2, 3, TH, Wp, Cin) strips  OR  (2, TH+2d, Wp, Cin) contiguous halo.
    n = pl.program_id(0)
    r = pl.program_id(1)
    num_r = pl.num_programs(1)
    slot = r % 2

    def copies(rr, sl):
        base = n * Htot + off + rr * TH
        if strips:
            return [pltpu.make_async_copy(
                        xp_hbm.at[pl.ds(base + dy * d, TH), pl.ds(off, Wp)],
                        xbuf.at[sl, dy], sems.at[sl, dy]) for dy in range(3)]
        return [pltpu.make_async_copy(
                    xp_hbm.at[pl.ds(base, TH + 2 * d), pl.ds(off, Wp)],
                    xbuf.at[sl], sems.at[sl, 0])]

    @pl.when(r == 0)
    def _():
        # Weights are constant across the grid: keep them single-buffered in a VMEM
        # scratch, loaded once per image (instead of a double-buffered BlockSpec).
        pltpu.sync_copy(w_hbm, w_vmem)
        for c in copies(r, slot):          # prime this image's first row tile
            c.start()

    for c in copies(r, slot):              # strips for this tile (already in flight)
        c.wait()

    @pl.when(r + 1 < num_r)
    def _():
        for c in copies(r + 1, (r + 1) % 2):   # prefetch next tile (double buffer)
            c.start()

    # dx-fused taps: one (TH*W, 3*Cin) patch per dy -> 3 matmuls, f32 acc in VMEM.
    for dy in range(3):
        if strips:
            strip = xbuf[slot, dy]                          # (TH, Wp, Cin)
        else:
            strip = xbuf[slot, dy * d:dy * d + TH]          # (TH, Wp, Cin)
        patch = jnp.concatenate(
            [strip[:, dx * d:dx * d + W, :] for dx in range(3)], axis=-1)
        z = jnp.dot(patch.reshape(TH * W, 3 * Cin), w_vmem[dy],
                    preferred_element_type=jnp.float32)
        if dy == 0:
            acc_ref[...] = z
        else:
            acc_ref[...] += z

    y = acc_ref[...] * scale_ref[...] + shift_ref[...]
    o_ref[...] = jnp.maximum(y, 0.0).astype(o_ref.dtype)


def conv3x3_bn_relu(xp_flat, w_hwio, scale, shift, *, N, H, W, Hpad, pad, dilation,
                    TH, out_dtype):
    """3x3 'same' conv (stride 1, dilation d, no bias) + folded BN + ReLU.

    xp_flat: (N*(Hpad+2*pad), W+2*pad, Cin) input zero-padded by `pad` >= dilation
             per side (rows additionally padded so Hpad % TH == 0), batches stacked.
    """
    d = int(dilation)
    Cin = xp_flat.shape[-1]
    Cout = w_hwio.shape[-1]
    Wp = W + 2 * d
    Htot = Hpad + 2 * pad
    off = pad - d
    R = Hpad // TH
    strips = TH <= d                  # strip fetch (3*TH rows) vs contiguous (TH+2d)
    cap = _vmem_capacity_bytes()

    in_itm = jnp.dtype(xp_flat.dtype).itemsize
    w_itm = jnp.dtype(w_hwio.dtype).itemsize
    out_itm = jnp.dtype(out_dtype).itemsize
    need = _conv3x3_vmem_need(TH, W, Cin, Cout, d, in_itm, w_itm, out_itm)
    vmem = min(max(int(1.25 * need), 24 << 20), int(0.9 * cap))

    w_packed = w_hwio.reshape(3, 3 * Cin, Cout)      # per dy: rows ordered (dx, cin)
    xbuf_shape = (2, 3, TH, Wp, Cin) if strips else (2, TH + 2 * d, Wp, Cin)

    kernel = functools.partial(
        _conv3x3_kernel, TH=TH, W=W, Wp=Wp, Cin=Cin, d=d,
        Htot=Htot, off=off, strips=strips)

    out = pl.pallas_call(
        kernel,
        out_shape=jax.ShapeDtypeStruct((N, Hpad * W, Cout), out_dtype),
        grid=(N, R),
        in_specs=[
            pl.BlockSpec(memory_space=pl.ANY),       # padded input rows, HBM
            pl.BlockSpec(memory_space=pl.ANY),       # packed weights, HBM
            pl.BlockSpec((1, Cout), lambda n, r: (0, 0)),
            pl.BlockSpec((1, Cout), lambda n, r: (0, 0)),
        ],
        # Lane/sublane-dense slab: TH*W % 8 == 0 (or full dim), Cout % 128 == 0.
        out_specs=pl.BlockSpec((None, TH * W, Cout), lambda n, r: (n, r, 0)),
        scratch_shapes=[
            pltpu.VMEM((3, 3 * Cin, Cout), w_hwio.dtype),  # single-buffered weights
            pltpu.VMEM(xbuf_shape, xp_flat.dtype),         # 2-slot strip buffer
            pltpu.VMEM((TH * W, Cout), jnp.float32),       # f32 accumulator
            pltpu.SemaphoreType.DMA((2, 3)),
        ],
        compiler_params=pltpu.CompilerParams(
            # row axis 'arbitrary' keeps the cross-step strip prefetch in order;
            # batch axis 'parallel' is megacore-shardable on v7x.
            dimension_semantics=("parallel", "arbitrary"),
            vmem_limit_bytes=vmem),
    )(xp_flat, w_packed,
      scale.reshape(1, -1).astype(jnp.float32),
      shift.reshape(1, -1).astype(jnp.float32))
    return out.reshape(N, Hpad, W, Cout)[:, :H]


# ----------------------------------------------------------------------------
# ASPP forward (eval mode)
# ----------------------------------------------------------------------------
def init_params(key, in_dim, out_dim):
    ks = jax.random.split(key, 12)

    def winit(k, shape, s=0.05):
        return s * jax.random.normal(k, shape, jnp.float32)

    def bn_init(k, c):
        z = jax.random.normal(k, (4, c), jnp.float32)
        return dict(gamma=1.0 + 0.1 * z[0], beta=0.1 * z[1],
                    mean=0.05 * z[2], var=1.0 + 0.1 * jnp.abs(z[3]))

    return {
        "w0": winit(ks[0], (in_dim, out_dim)),          "bn0": bn_init(ks[1], out_dim),
        "w1": winit(ks[2], (3, 3, in_dim, out_dim)),    "bn1": bn_init(ks[3], out_dim),
        "w2": winit(ks[4], (3, 3, in_dim, out_dim)),    "bn2": bn_init(ks[5], out_dim),
        "w3": winit(ks[6], (3, 3, in_dim, out_dim)),    "bn3": bn_init(ks[7], out_dim),
        "w4": winit(ks[8], (in_dim, out_dim)),          "bn4": bn_init(ks[9], out_dim),
        "wp": winit(ks[10], (3, 3, 5 * out_dim, out_dim)), "bnp": bn_init(ks[11], out_dim),
    }


def aspp_forward(params, x_nchw, d_rate=(12, 24, 36), *, dtype=jnp.float32,
                 row_tile=32, tile_m=1024):
    """Exact eval-mode forward of ASPPModule.  Returns NCHW."""
    N, Cin, H, W = x_nchw.shape
    out_dim = params["w0"].shape[1]
    Cin_p = _round_up(Cin, 128)
    Cout_p = _round_up(out_dim, 128)
    cap = _vmem_capacity_bytes()
    budget = int(0.6 * cap)
    itm = jnp.dtype(dtype).itemsize

    x = jnp.transpose(x_nchw, (0, 2, 3, 1))                       # NHWC
    x = jnp.pad(x, ((0, 0), (0, 0), (0, 0), (0, Cin_p - Cin))).astype(dtype)
    x2d = x.reshape(N * H * W, Cin_p)

    def pad_w1x1(w):
        return jnp.pad(w, ((0, Cin_p - w.shape[0]), (0, Cout_p - w.shape[1])))

    def pad_w3x3(w):
        return jnp.pad(w, ((0, 0), (0, 0),
                           (0, Cin_p - w.shape[2]), (0, Cout_p - w.shape[3])))

    # ---- b0: 1x1 conv + BN + ReLU --------------------------------------------
    # TODO(synk): the global-average-pool partial sums for b4 could be fused into
    # this kernel (per-batch accumulator output) to save one full read of x.
    s, b = _bn_scale_shift(params["bn0"])
    feat0 = conv1x1_affine(x2d, pad_w1x1(params["w0"]).astype(dtype),
                           _pad_vec(s, Cout_p, 1.0), _pad_vec(b, Cout_p),
                           relu=True, tile_m=tile_m).reshape(N, H, W, Cout_p)
    feats = [feat0]

    # ---- b1..b3: dilated 3x3 convs share ONE max-dilation padded copy of x ----
    d_list = [int(d) for d in d_rate]
    d_max = max(d_list)
    TH = _pick_row_tile(H, W, Cin_p, Cout_p, d_list, itm, itm, itm, budget, row_tile)
    Hpad = _round_up(H, TH)
    xp = jnp.pad(x, ((0, 0), (d_max, d_max + Hpad - H), (d_max, d_max), (0, 0)))
    xp_flat = xp.reshape(N * (Hpad + 2 * d_max), W + 2 * d_max, Cin_p)
    for i, d in enumerate(d_list, start=1):
        s, b = _bn_scale_shift(params[f"bn{i}"])
        feats.append(conv3x3_bn_relu(
            xp_flat, pad_w3x3(params[f"w{i}"]).astype(dtype),
            _pad_vec(s, Cout_p, 1.0), _pad_vec(b, Cout_p),
            N=N, H=H, W=W, Hpad=Hpad, pad=d_max, dilation=d, TH=TH,
            out_dtype=dtype))

    # ---- b4: global average pool -> 1x1 conv + BN + ReLU -> upsample ----------
    # F.interpolate(bilinear, align_corners=True) from a 1x1 source == broadcast.
    s, b = _bn_scale_shift(params["bn4"])
    # (bf16 path pools bf16 values in f32: tiny precision delta vs a pure-f32 pool.)
    pooled = jnp.mean(x.astype(jnp.float32), axis=(1, 2)).astype(dtype)  # (N, Cin_p)
    g = conv1x1_affine(pooled, pad_w1x1(params["w4"]).astype(dtype),
                       _pad_vec(s, Cout_p, 1.0), _pad_vec(b, Cout_p),
                       relu=True, tile_m=tile_m)                          # (N, Cout_p)
    feats.append(jnp.broadcast_to(g[:, None, None, :], (N, H, W, Cout_p)))

    # TODO(synk): the concat + broadcast could be removed entirely by splitting the
    # project conv's Cin into 5 per-branch weight slices accumulated in-kernel (with
    # an edge correction for the spatially-constant pooled branch).
    cat = jnp.concatenate(feats, axis=-1)                 # (N, H, W, 5*Cout_p)

    # ---- project: 3x3 conv (pad 1) + BN + ReLU --------------------------------
    # Re-pack weights to the padded channel layout [b0 | pad | b1 | pad | ...].
    s, b = _bn_scale_shift(params["bnp"])
    wp = params["wp"].reshape(3, 3, 5, out_dim, out_dim)
    wp = jnp.pad(wp, ((0, 0), (0, 0), (0, 0),
                      (0, Cout_p - out_dim), (0, Cout_p - out_dim)))
    wp = wp.reshape(3, 3, 5 * Cout_p, Cout_p)
    TH_pr = _pick_row_tile(H, W, 5 * Cout_p, Cout_p, [1], itm, itm, itm,
                           budget, row_tile)
    Hpad_pr = _round_up(H, TH_pr)
    cp = jnp.pad(cat, ((0, 0), (1, 1 + Hpad_pr - H), (1, 1), (0, 0)))
    cp_flat = cp.reshape(N * (Hpad_pr + 2), W + 2, 5 * Cout_p)
    out = conv3x3_bn_relu(cp_flat, wp.astype(dtype),
                          _pad_vec(s, Cout_p, 1.0), _pad_vec(b, Cout_p),
                          N=N, H=H, W=W, Hpad=Hpad_pr, pad=1, dilation=1, TH=TH_pr,
                          out_dtype=dtype)

    out = out[..., :out_dim]                              # drop channel padding
    return jnp.transpose(out, (0, 3, 1, 2))               # NCHW


# ----------------------------------------------------------------------------
# Pure-JAX / XLA reference for correctness checks
# ----------------------------------------------------------------------------
def reference_forward(params, x_nchw, d_rate=(12, 24, 36)):
    x = jnp.transpose(x_nchw, (0, 2, 3, 1)).astype(jnp.float32)
    N, H, W, _ = x.shape

    def conv(inp, w, pad, dil=(1, 1)):
        return jax.lax.conv_general_dilated(
            inp, w, window_strides=(1, 1), padding=pad, rhs_dilation=dil,
            dimension_numbers=("NHWC", "HWIO", "NHWC"))

    s, b = _bn_scale_shift(params["bn0"])
    feats = [jnp.maximum(conv(x, params["w0"][None, None], "VALID") * s + b, 0.0)]
    for i, d in enumerate(d_rate, start=1):
        s, b = _bn_scale_shift(params[f"bn{i}"])
        feats.append(jnp.maximum(
            conv(x, params[f"w{i}"], ((d, d), (d, d)), (d, d)) * s + b, 0.0))
    s, b = _bn_scale_shift(params["bn4"])
    pooled = jnp.mean(x, axis=(1, 2), keepdims=True)
    g = jnp.maximum(conv(pooled, params["w4"][None, None], "VALID") * s + b, 0.0)
    feats.append(jnp.broadcast_to(g, (N, H, W, g.shape[-1])))
    cat = jnp.concatenate(feats, axis=-1)
    s, b = _bn_scale_shift(params["bnp"])
    out = jnp.maximum(conv(cat, params["wp"], ((1, 1), (1, 1))) * s + b, 0.0)
    return jnp.transpose(out, (0, 3, 1, 2))


if __name__ == "__main__":
    in_dim, out_dim = 4, 8
    d_rate = (2, 6, 12)       # includes a rate >= the small row tile -> strip path runs
    key = jax.random.PRNGKey(0)
    kx, kp = jax.random.split(key)

    x = jax.random.normal(kx, (2, in_dim, 16, 16), jnp.float32)   # NCHW
    params = init_params(kp, in_dim, out_dim)
    ref = reference_forward(params, x, d_rate)

    # f32, small row tile: exercises strip fetch + double-buffered DMA (tight check)
    out_f32 = aspp_forward(params, x, d_rate, dtype=jnp.float32, row_tile=8)
    jax.block_until_ready(out_f32)
    np.testing.assert_allclose(np.asarray(out_f32), np.asarray(ref),
                               atol=2e-3, rtol=2e-2)

    # bf16 activations/weights with f32 accumulation, default tiles (loose check)
    out_bf16 = aspp_forward(params, x, d_rate, dtype=jnp.bfloat16)
    jax.block_until_ready(out_bf16)
    np.testing.assert_allclose(np.asarray(out_bf16.astype(jnp.float32)),
                               np.asarray(ref), atol=3e-2, rtol=8e-2)

    print("KERNEL_OK")
</pallas_src>

<mosaic_0001>
module attributes {stable_mosaic.version = 11 : i64} {
  func.func @_matmul_affine_kernel(%arg0: i32, %arg1: memref<512x128xf32, #tpu.memory_space<vmem>>, %arg2: memref<128x128xf32, #tpu.memory_space<vmem>>, %arg3: memref<1x128xf32, #tpu.memory_space<vmem>>, %arg4: memref<1x128xf32, #tpu.memory_space<vmem>>, %arg5: memref<512x128xf32, #tpu.memory_space<vmem>>) attributes {dimension_semantics = [#tpu.dimension_semantics<parallel>], iteration_bounds = array<i64: 1>, scalar_prefetch = 0 : i64, scratch_operands = 0 : i64, tpu.core_type = #tpu.core_type<tc>, window_params = [{transform_indices = @transform_0, window_bounds = array<i64: 512, 128>}, {pipeline_mode = #tpu.pipeline_mode<synchronous>, transform_indices = @transform_1, window_bounds = array<i64: 128, 128>}, {pipeline_mode = #tpu.pipeline_mode<synchronous>, transform_indices = @transform_2, window_bounds = array<i64: 1, 128>}, {pipeline_mode = #tpu.pipeline_mode<synchronous>, transform_indices = @transform_3, window_bounds = array<i64: 1, 128>}, {transform_indices = @transform_4, window_bounds = array<i64: 512, 128>}]} {
    %c0 = arith.constant 0 : index
    %c0_0 = arith.constant 0 : index
    %0 = vector.load %arg1[%c0, %c0_0] : memref<512x128xf32, #tpu.memory_space<vmem>>, vector<512x128xf32>
    %c0_1 = arith.constant 0 : index
    %c0_2 = arith.constant 0 : index
    %1 = vector.load %arg2[%c0_1, %c0_2] : memref<128x128xf32, #tpu.memory_space<vmem>>, vector<128x128xf32>
    %cst = arith.constant dense<0.000000e+00> : vector<512x128xf32>
    %2 = tpu.matmul %0, %1, %cst {dimension_numbers = #tpu.dot_dimension_numbers<[1], [0], [0], [1], [0, 0, 1, 1], [], []>} : vector<512x128xf32>, vector<128x128xf32>, vector<512x128xf32> -> vector<512x128xf32>
    %c0_3 = arith.constant 0 : index
    %c0_4 = arith.constant 0 : index
    %3 = vector.load %arg3[%c0_3, %c0_4] : memref<1x128xf32, #tpu.memory_space<vmem>>, vector<1x128xf32>
    %4 = vector.broadcast %3 : vector<1x128xf32> to vector<512x128xf32>
    %5 = arith.mulf %2, %4 : vector<512x128xf32>
    %c0_5 = arith.constant 0 : index
    %c0_6 = arith.constant 0 : index
    %6 = vector.load %arg4[%c0_5, %c0_6] : memref<1x128xf32, #tpu.memory_space<vmem>>, vector<1x128xf32>
    %7 = vector.broadcast %6 : vector<1x128xf32> to vector<512x128xf32>
    %8 = arith.addf %5, %7 : vector<512x128xf32>
    %cst_7 = arith.constant 0.000000e+00 : f32
    %9 = vector.broadcast %cst_7 : f32 to vector<512x128xf32>
    %10 = arith.maximumf %8, %9 : vector<512x128xf32>
    %c0_8 = arith.constant 0 : index
    %c0_9 = arith.constant 0 : index
    %11 = vector.load %arg5[%c0_8, %c0_9] : memref<512x128xf32, #tpu.memory_space<vmem>>, vector<512x128xf32>
    tpu.vector_store %arg5[%c0_8, %c0_9], %10 {strides = array<i32>} : memref<512x128xf32, #tpu.memory_space<vmem>>, vector<512x128xf32>,
    return
  }
  func.func @transform_0(%arg0: i32) -> (i32, i32) {
    %c0_i32 = arith.constant 0 : i32
    %c0_i32_0 = arith.constant 0 : i32
    return %arg0, %c0_i32 : i32, i32
  }
  func.func @transform_1(%arg0: i32) -> (i32, i32) {
    %c0_i32 = arith.constant 0 : i32
    %c0_i32_0 = arith.constant 0 : i32
    %c0_i32_1 = arith.constant 0 : i32
    return %c0_i32, %c0_i32_0 : i32, i32
  }
  func.func @transform_2(%arg0: i32) -> (i32, i32) {
    %c0_i32 = arith.constant 0 : i32
    %c0_i32_0 = arith.constant 0 : i32
    %c0_i32_1 = arith.constant 0 : i32
    return %c0_i32, %c0_i32_0 : i32, i32
  }
  func.func @transform_3(%arg0: i32) -> (i32, i32) {
    %c0_i32 = arith.constant 0 : i32
    %c0_i32_0 = arith.constant 0 : i32
    %c0_i32_1 = arith.constant 0 : i32
    return %c0_i32, %c0_i32_0 : i32, i32
  }
  func.func @transform_4(%arg0: i32) -> (i32, i32) {
    %c0_i32 = arith.constant 0 : i32
    %c0_i32_0 = arith.constant 0 : i32
    return %arg0, %c0_i32 : i32, i32
  }
}

</mosaic_0001>

<bundles_post_ra>
// kernel: tpu_custom_call.1
= control target key start
LH: loop header
LB: loop body
LE: loop exit
PB: predicated region body
PF: predicated region fallthrough
CT: control target
= control target key end

     0   :  { %9 = vsyncpa [#allocation3], 0  ;;  %s942_s0 = inlined_call_operand.hbm [shape: f32[512,128], index: 0, kind: input, shape index: {}]   ;;  %s943_s1 = inlined_call_operand.hbm [shape: f32[128,128], index: 1, kind: input, shape index: {}]   ;;  %s944_s2 = inlined_call_operand.vmem [shape: f32[1,128], index: 2, kind: input, shape index: {}]   ;;  %s945_s3 = inlined_call_operand.vmem [shape: f32[1,128], index: 3, kind: input, shape index: {}]   ;;  %s946_s4 = inlined_call_operand.hbm [shape: f32[512,128], index: 4, kind: output, shape index: {}]  }
   0x1   :  { %10 = vsyncpa [#allocation6], 0 }
   0x2   :  { %11 = vsyncpa [#allocation4], 0  ;;  %s16_s17 = sshll.u32 %s942_s0, 4  ;;  %s756_s18 = smov [#allocation2]   ;;  %s17_s17 = int_to_ptr.hbm [resolvable:$true] %s16_s17 }
   0x3   :  { %s18_s19 = sshll.u32 %s756_s18, 4  ;;  %s29_s22 = sshll.u32 %s943_s1, 4  ;;  %s19_s19 = int_to_ptr.vmem [resolvable:$true] %s18_s19  ;;  %s30_s22 = int_to_ptr.hbm [resolvable:$true] %s29_s22 }
   0x4   :  { %s757_s23 = smov 128   ;;  %s758_s24 = smov 8  }
   0x5   :  { %24 = dma.hbm_to_vmem [thread:$0]  %s17_s17, 8192, %s19_s19, [#allocation3], %s757_s23, %s757_s23, %s758_s24  }
   0x6   :  { %s759_s25 = smov [#allocation5]  }
   0x7   :  { %s31_s26 = sshll.u32 %s759_s25, 4  ;;  %s32_s26 = int_to_ptr.vmem [resolvable:$true] %s31_s26 }
   0x8   :  { %37 = dma.hbm_to_vmem [thread:$0]  %s30_s22, 2048, %s32_s26, [#allocation6], %s757_s23, %s757_s23, %s758_s24  }
   0x9   :  { %750 = dma.done.wait [#allocation3], 8192  }
   0xa   :  { %751 = vsyncadd [#allocation3], 4294959104 }
   0xb   :  { %752 = dma.done.wait [#allocation6], 2048  }
   0xc   :  { %753 = vsyncadd [#allocation6], 4294965248  ;;  %v129_v0 = vld [vmem:[#allocation5 + $0x78] sm:$0xff]  ;;  %v128_v1 = vld [vmem:[#allocation5 + $0x70] sm:$0xff]  ;;  %s609_s5 = sshll.u32 %s946_s4, 4  ;;  %s610_s5 = int_to_ptr.hbm [resolvable:$true] %s609_s5 }
   0xd   :  { %624 = vmatpush.msra.mxu2 %v129_v0  ;;  %625 = vmatpush.msra.mxu3 %v129_v0  ;;  %v127_v2 = vld [vmem:[#allocation5 + $0x68] sm:$0xff]  ;;  %v126_v3 = vld [vmem:[#allocation5 + $0x60] sm:$0xff]  ;;  %v125_v4 = vld [vmem:[#allocation5 + $0x58] sm:$0xff] }
   0xe   :  { %130 = vmatpush.msra.mxu0 %v129_v0  ;;  %623 = vmatpush.msra.mxu1 %v129_v0  ;;  %v124_v5 = vld [vmem:[#allocation5 + $0x50] sm:$0xff]  ;;  %v123_v6 = vld [vmem:[#allocation5 + $0x48] sm:$0xff]  ;;  %v122_v7 = vld [vmem:[#allocation5 + $0x40] sm:$0xff] }
   0xf   :  { %627 = vmatpush.msra.mxu2 %v128_v1  ;;  %628 = vmatpush.msra.mxu3 %v128_v1  ;;  %v121_v8 = vld [vmem:[#allocation5 + $0x38] sm:$0xff]  ;;  %v120_v9 = vld [vmem:[#allocation5 + $0x30] sm:$0xff]  ;;  %v119_v10 = vld [vmem:[#allocation5 + $0x28] sm:$0xff] }
  0x10   :  { %131 = vmatpush.msra.mxu0 %v128_v1  ;;  %626 = vmatpush.msra.mxu1 %v128_v1  ;;  %v118_v11 = vld [vmem:[#allocation5 + $0x20] sm:$0xff]  ;;  %v117_v12 = vld [vmem:[#allocation5 + $0x18] sm:$0xff]  ;;  %v116_v13 = vld [vmem:[#allocation5 + $0x10] sm:$0xff] }
  0x11   :  { %630 = vmatpush.msra.mxu2 %v127_v2  ;;  %631 = vmatpush.msra.mxu3 %v127_v2  ;;  %v115_v14 = vld [vmem:[#allocation5 + $0x8] sm:$0xff]  ;;  %v114_v15 = vld [vmem:[#allocation5] sm:$0xff]  ;;  %v84_v24 = vld [vmem:[#allocation2 + $0x110] sm:$0xff] }
  0x12   :  { %132 = vmatpush.msra.mxu0 %v127_v2  ;;  %629 = vmatpush.msra.mxu1 %v127_v2  ;;  %v82_v16 = vld [vmem:[#allocation2 + $0x100] sm:$0xff]  ;;  %v83_v20 = vld [vmem:[#allocation2 + $0x108] sm:$0xff]  ;;  %v100_v25 = vld [vmem:[#allocation2 + $0x190] sm:$0xff] }
  0x13   :  { %633 = vmatpush.msra.mxu2 %v126_v3  ;;  %634 = vmatpush.msra.mxu3 %v126_v3  ;;  %v98_v17 = vld [vmem:[#allocation2 + $0x180] sm:$0xff]  ;;  %v99_v21 = vld [vmem:[#allocation2 + $0x188] sm:$0xff]  ;;  %v52_v26 = vld [vmem:[#allocation2 + $0x10] sm:$0xff] }
  0x14   :  { %133 = vmatpush.msra.mxu0 %v126_v3  ;;  %632 = vmatpush.msra.mxu1 %v126_v3  ;;  %v50_v18 = vld [vmem:[#allocation2] sm:$0xff]  ;;  %v51_v22 = vld [vmem:[#allocation2 + $0x8] sm:$0xff]  ;;  %v68_v27 = vld [vmem:[#allocation2 + $0x90] sm:$0xff] }
  0x15   :  { %636 = vmatpush.msra.mxu2 %v125_v4  ;;  %637 = vmatpush.msra.mxu3 %v125_v4  ;;  %v66_v19 = vld [vmem:[#allocation2 + $0x80] sm:$0xff]  ;;  %v67_v23 = vld [vmem:[#allocation2 + $0x88] sm:$0xff]  ;;  %v85_v28 = vld [vmem:[#allocation2 + $0x118] sm:$0xff] }
  0x16   :  { %134 = vmatpush.msra.mxu0 %v125_v4  ;;  %635 = vmatpush.msra.mxu1 %v125_v4  ;;  %v101_v29 = vld [vmem:[#allocation2 + $0x198] sm:$0xff]  ;;  %v86_v32 = vld [vmem:[#allocation2 + $0x120] sm:$0xff]  ;;  %v87_v36 = vld [vmem:[#allocation2 + $0x128] sm:$0xff] }
  0x17   :  { %639 = vmatpush.msra.mxu2 %v124_v5  ;;  %640 = vmatpush.msra.mxu3 %v124_v5  ;;  %v53_v30 = vld [vmem:[#allocation2 + $0x18] sm:$0xff]  ;;  %v102_v33 = vld [vmem:[#allocation2 + $0x1a0] sm:$0xff]  ;;  %v103_v37 = vld [vmem:[#allocation2 + $0x1a8] sm:$0xff] }
  0x18   :  { %135 = vmatpush.msra.mxu0 %v124_v5  ;;  %638 = vmatpush.msra.mxu1 %v124_v5  ;;  %v69_v31 = vld [vmem:[#allocation2 + $0x98] sm:$0xff]  ;;  %v54_v34 = vld [vmem:[#allocation2 + $0x20] sm:$0xff]  ;;  %v55_v38 = vld [vmem:[#allocation2 + $0x28] sm:$0xff] }
  0x19   :  { %642 = vmatpush.msra.mxu2 %v123_v6  ;;  %643 = vmatpush.msra.mxu3 %v123_v6  ;;  %v70_v35 = vld [vmem:[#allocation2 + $0xa0] sm:$0xff]  ;;  %v71_v39 = vld [vmem:[#allocation2 + $0xa8] sm:$0xff]  ;;  %v88_v40 = vld [vmem:[#allocation2 + $0x130] sm:$0xff] }
  0x1a   :  { %136 = vmatpush.msra.mxu0 %v123_v6  ;;  %641 = vmatpush.msra.mxu1 %v123_v6  ;;  %v104_v41 = vld [vmem:[#allocation2 + $0x1b0] sm:$0xff]  ;;  %v89_v44 = vld [vmem:[#allocation2 + $0x138] sm:$0xff]  ;;  %v90_v48 = vld [vmem:[#allocation2 + $0x140] sm:$0xff] }
  0x1b   :  { %645 = vmatpush.msra.mxu2 %v122_v7  ;;  %646 = vmatpush.msra.mxu3 %v122_v7  ;;  %v56_v42 = vld [vmem:[#allocation2 + $0x30] sm:$0xff]  ;;  %v105_v45 = vld [vmem:[#allocation2 + $0x1b8] sm:$0xff]  ;;  %v106_v49 = vld [vmem:[#allocation2 + $0x1c0] sm:$0xff] }
  0x1c   :  { %137 = vmatpush.msra.mxu0 %v122_v7  ;;  %644 = vmatpush.msra.mxu1 %v122_v7  ;;  %v72_v43 = vld [vmem:[#allocation2 + $0xb0] sm:$0xff]  ;;  %v57_v46 = vld [vmem:[#allocation2 + $0x38] sm:$0xff]  ;;  %v58_v50 = vld [vmem:[#allocation2 + $0x40] sm:$0xff] }
  0x1d   :  { %648 = vmatpush.msra.mxu2 %v121_v8  ;;  %649 = vmatpush.msra.mxu3 %v121_v8  ;;  %v73_v47 = vld [vmem:[#allocation2 + $0xb8] sm:$0xff]  ;;  %v74_v51 = vld [vmem:[#allocation2 + $0xc0] sm:$0xff]  ;;  %v91_v52 = vld [vmem:[#allocation2 + $0x148] sm:$0xff] }
  0x1e   :  { %138 = vmatpush.msra.mxu0 %v121_v8  ;;  %647 = vmatpush.msra.mxu1 %v121_v8  ;;  %v107_v53 = vld [vmem:[#allocation2 + $0x1c8] sm:$0xff]  ;;  %v92_v56 = vld [vmem:[#allocation2 + $0x150] sm:$0xff]  ;;  %v93_v60 = vld [vmem:[#allocation2 + $0x158] sm:$0xff] }
  0x1f   :  { %651 = vmatpush.msra.mxu2 %v120_v9  ;;  %652 = vmatpush.msra.mxu3 %v120_v9  ;;  %v59_v54 = vld [vmem:[#allocation2 + $0x48] sm:$0xff]  ;;  %v108_v57 = vld [vmem:[#allocation2 + $0x1d0] sm:$0xff]  ;;  %v109_v61 = vld [vmem:[#allocation2 + $0x1d8] sm:$0xff] }
  0x20   :  { %139 = vmatpush.msra.mxu0 %v120_v9  ;;  %650 = vmatpush.msra.mxu1 %v120_v9  ;;  %v75_v55 = vld [vmem:[#allocation2 + $0xc8] sm:$0xff]  ;;  %v60_v58 = vld [vmem:[#allocation2 + $0x50] sm:$0xff]  ;;  %v61_v62 = vld [vmem:[#allocation2 + $0x58] sm:$0xff] }
  0x21   :  { %654 = vmatpush.msra.mxu2 %v119_v10  ;;  %655 = vmatpush.msra.mxu3 %v119_v10  ;;  %v76_v59 = vld [vmem:[#allocation2 + $0xd0] sm:$0xff]  ;;  %v77_v63 = vld [vmem:[#allocation2 + $0xd8] sm:$0xff]  ;;  %v94_v0 = vld [vmem:[#allocation2 + $0x160] sm:$0xff] }
  0x22   :  { %140 = vmatpush.msra.mxu0 %v119_v10  ;;  %653 = vmatpush.msra.mxu1 %v119_v10  ;;  %v110_v1 = vld [vmem:[#allocation2 + $0x1e0] sm:$0xff]  ;;  %v95_v4 = vld [vmem:[#allocation2 + $0x168] sm:$0xff]  ;;  %v96_v8 = vld [vmem:[#allocation2 + $0x170] sm:$0xff] }
  0x23   :  { %657 = vmatpush.msra.mxu2 %v118_v11  ;;  %658 = vmatpush.msra.mxu3 %v118_v11  ;;  %v62_v2 = vld [vmem:[#allocation2 + $0x60] sm:$0xff]  ;;  %v111_v5 = vld [vmem:[#allocation2 + $0x1e8] sm:$0xff]  ;;  %v112_v9 = vld [vmem:[#allocation2 + $0x1f0] sm:$0xff] }
  0x24   :  { %141 = vmatpush.msra.mxu0 %v118_v11  ;;  %656 = vmatpush.msra.mxu1 %v118_v11  ;;  %v78_v3 = vld [vmem:[#allocation2 + $0xe0] sm:$0xff]  ;;  %v63_v6 = vld [vmem:[#allocation2 + $0x68] sm:$0xff]  ;;  %v64_v10 = vld [vmem:[#allocation2 + $0x70] sm:$0xff] }
  0x25   :  { %660 = vmatpush.msra.mxu2 %v117_v12  ;;  %661 = vmatpush.msra.mxu3 %v117_v12  ;;  %v79_v7 = vld [vmem:[#allocation2 + $0xe8] sm:$0xff]  ;;  %v80_v11 = vld [vmem:[#allocation2 + $0xf0] sm:$0xff] }
  0x26   :  { %142 = vmatpush.msra.mxu0 %v117_v12  ;;  %659 = vmatpush.msra.mxu1 %v117_v12  ;;  %v97_v12 = vld [vmem:[#allocation2 + $0x178] sm:$0xff] }
  0x27   :  { %663 = vmatpush.msra.mxu2 %v116_v13  ;;  %664 = vmatpush.msra.mxu3 %v116_v13 }
  0x28   :  { %143 = vmatpush.msra.mxu0 %v116_v13  ;;  %662 = vmatpush.msra.mxu1 %v116_v13  ;;  %v113_v13 = vld [vmem:[#allocation2 + $0x1f8] sm:$0xff] }
  0x29   :  { %666 = vmatpush.msra.mxu2 %v115_v14  ;;  %667 = vmatpush.msra.mxu3 %v115_v14 }
  0x2a   :  { %144 = vmatpush.msra.mxu0 %v115_v14  ;;  %665 = vmatpush.msra.mxu1 %v115_v14  ;;  %v65_v14 = vld [vmem:[#allocation2 + $0x78] sm:$0xff] }
  0x2b   :  { %669 = vmatpush.msra.mxu2 %v114_v15  ;;  %670 = vmatpush.msra.mxu3 %v114_v15 }
  0x2c   :  { %242 = vmatmul.f32.vlgmr.msra.gmra.mxu2 %v82_v16  ;;  %290 = vmatmul.f32.vlgmr.msra.gmra.mxu3 %v98_v17  ;;  %v801_v16 = vld [vmem:[%s944_s2] ss:$0 sm:$0xff]  ;;  %s760_s2 = smov [#allocation7]  }
  0x2d   :  { %145 = vmatpush.msra.mxu0 %v114_v15  ;;  %668 = vmatpush.msra.mxu1 %v114_v15  ;;  %v81_v15 = vld [vmem:[#allocation2 + $0xf8] sm:$0xff]  ;;  %v806_v17 = vld [vmem:[%s945_s3] ss:$0 sm:$0xff]  ;;  %s607_s3 = sshll.u32 %s760_s2, 4  ;;  %s608_s3 = int_to_ptr.vmem [resolvable:$true] %s607_s3 }
  0x2e   :  { %146 = vmatmul.f32.vlgmr.msra.gmra.mxu0 %v50_v18  ;;  %194 = vmatmul.f32.vlgmr.msra.gmra.mxu1 %v66_v19 }
  0x34   :  { %245 = vmatmul.f32.gmra.mxu2 %v83_v20  ;;  %293 = vmatmul.f32.gmra.mxu3 %v99_v21 }
  0x36   :  { %149 = vmatmul.f32.gmra.mxu0 %v51_v22  ;;  %197 = vmatmul.f32.gmra.mxu1 %v67_v23 }
  0x3c   :  { %248 = vmatmul.f32.gmra.mxu2 %v84_v24  ;;  %296 = vmatmul.f32.gmra.mxu3 %v100_v25 }
  0x3e   :  { %152 = vmatmul.f32.gmra.mxu0 %v52_v26  ;;  %200 = vmatmul.f32.gmra.mxu1 %v68_v27 }
  0x44   :  { %251 = vmatmul.f32.gmra.mxu2 %v85_v28  ;;  %299 = vmatmul.f32.gmra.mxu3 %v101_v29 }
  0x46   :  { %155 = vmatmul.f32.gmra.mxu0 %v53_v30  ;;  %203 = vmatmul.f32.gmra.mxu1 %v69_v31 }
  0x4c   :  { %254 = vmatmul.f32.gmra.mxu2 %v86_v32  ;;  %302 = vmatmul.f32.gmra.mxu3 %v102_v33 }
  0x4e   :  { %158 = vmatmul.f32.gmra.mxu0 %v54_v34  ;;  %206 = vmatmul.f32.gmra.mxu1 %v70_v35 }
  0x54   :  { %257 = vmatmul.f32.gmra.mxu2 %v87_v36  ;;  %305 = vmatmul.f32.gmra.mxu3 %v103_v37 }
  0x56   :  { %161 = vmatmul.f32.gmra.mxu0 %v55_v38  ;;  %209 = vmatmul.f32.gmra.mxu1 %v71_v39 }
  0x5c   :  { %260 = vmatmul.f32.gmra.mxu2 %v88_v40  ;;  %308 = vmatmul.f32.gmra.mxu3 %v104_v41 }
  0x5e   :  { %164 = vmatmul.f32.gmra.mxu0 %v56_v42  ;;  %212 = vmatmul.f32.gmra.mxu1 %v72_v43 }
  0x64   :  { %263 = vmatmul.f32.gmra.mxu2 %v89_v44  ;;  %311 = vmatmul.f32.gmra.mxu3 %v105_v45 }
  0x66   :  { %167 = vmatmul.f32.gmra.mxu0 %v57_v46  ;;  %215 = vmatmul.f32.gmra.mxu1 %v73_v47 }
  0x6c   :  { %266 = vmatmul.f32.gmra.mxu2 %v90_v48  ;;  %314 = vmatmul.f32.gmra.mxu3 %v106_v49 }
  0x6e   :  { %170 = vmatmul.f32.gmra.mxu0 %v58_v50  ;;  %218 = vmatmul.f32.gmra.mxu1 %v74_v51 }
  0x74   :  { %269 = vmatmul.f32.gmra.mxu2 %v91_v52  ;;  %317 = vmatmul.f32.gmra.mxu3 %v107_v53 }
  0x76   :  { %173 = vmatmul.f32.gmra.mxu0 %v59_v54  ;;  %221 = vmatmul.f32.gmra.mxu1 %v75_v55 }
  0x7c   :  { %272 = vmatmul.f32.gmra.mxu2 %v92_v56  ;;  %320 = vmatmul.f32.gmra.mxu3 %v108_v57 }
  0x7e   :  { %176 = vmatmul.f32.gmra.mxu0 %v60_v58  ;;  %224 = vmatmul.f32.gmra.mxu1 %v76_v59 }
  0x84   :  { %275 = vmatmul.f32.gmra.mxu2 %v93_v60  ;;  %323 = vmatmul.f32.gmra.mxu3 %v109_v61 }
  0x86   :  { %179 = vmatmul.f32.gmra.mxu0 %v61_v62  ;;  %227 = vmatmul.f32.gmra.mxu1 %v77_v63 }
  0x8c   :  { %278 = vmatmul.f32.gmra.mxu2 %v94_v0  ;;  %326 = vmatmul.f32.gmra.mxu3 %v110_v1 }
  0x8e   :  { %182 = vmatmul.f32.gmra.mxu0 %v62_v2  ;;  %230 = vmatmul.f32.gmra.mxu1 %v78_v3 }
  0x94   :  { %281 = vmatmul.f32.gmra.mxu2 %v95_v4  ;;  %329 = vmatmul.f32.gmra.mxu3 %v111_v5 }
  0x96   :  { %185 = vmatmul.f32.gmra.mxu0 %v63_v6  ;;  %233 = vmatmul.f32.gmra.mxu1 %v79_v7 }
  0x9c   :  { %284 = vmatmul.f32.gmra.mxu2 %v96_v8  ;;  %332 = vmatmul.f32.gmra.mxu3 %v112_v9 }
  0x9e   :  { %188 = vmatmul.f32.gmra.mxu0 %v64_v10  ;;  %236 = vmatmul.f32.gmra.mxu1 %v80_v11 }
  0xa4   :  { %287 = vmatmul.f32.gmra.mxu2 %v97_v12  ;;  %335 = vmatmul.f32.gmra.mxu3 %v113_v13 }
  0xa6   :  { %191 = vmatmul.f32.gmra.mxu0 %v65_v14  ;;  %239 = vmatmul.f32.gmra.mxu1 %v81_v15 }
  0xab   :  { %v147_v18 = vpop.f32.mrf.mxu0  ;;  %v195_v19 = vpop.f32.mrf.mxu1 }
  0xac   :  { %v343_v20 = vmul.f32 %v801_v16, %v147_v18  ;;  %v359_v21 = vmul.f32 %v801_v16, %v195_v19 }
  0xae   :  { %v411_v22 = vadd.f32 %v806_v17, %v343_v20  ;;  %v427_v23 = vadd.f32 %v806_v17, %v359_v21 }
  0xaf   :  { %v243_v24 = vpop.f32.mrf.mxu2  ;;  %v291_v25 = vpop.f32.mrf.mxu3 }
  0xb0   :  { %v475_v26 = vmax.f32 %v411_v22, 0.0  ;;  %v491_v27 = vmax.f32 %v427_v23, 0.0  ;;  %v375_v28 = vmul.f32 %v801_v16, %v243_v24  ;;  %v391_v29 = vmul.f32 %v801_v16, %v291_v25 }
  0xb2   :  { %539 = vst [vmem:[#allocation7] sm:$0xff] %v475_v26  ;;  %v443_v30 = vadd.f32 %v806_v17, %v375_v28  ;;  %v459_v31 = vadd.f32 %v806_v17, %v391_v29 }
  0xb3   :  { %555 = vst [vmem:[#allocation7 + $0x80] sm:$0xff] %v491_v27  ;;  %v150_v32 = vpop.f32.mrf.mxu0  ;;  %v198_v33 = vpop.f32.mrf.mxu1 }
  0xb4   :  { %v507_v34 = vmax.f32 %v443_v30, 0.0  ;;  %v523_v35 = vmax.f32 %v459_v31, 0.0  ;;  %v344_v36 = vmul.f32 %v801_v16, %v150_v32  ;;  %v360_v37 = vmul.f32 %v801_v16, %v198_v33 }
  0xb6   :  { %571 = vst [vmem:[#allocation7 + $0x100] sm:$0xff] %v507_v34  ;;  %v412_v38 = vadd.f32 %v806_v17, %v344_v36  ;;  %v428_v39 = vadd.f32 %v806_v17, %v360_v37 }
  0xb7   :  { %587 = vst [vmem:[#allocation7 + $0x180] sm:$0xff] %v523_v35  ;;  %v246_v40 = vpop.f32.mrf.mxu2  ;;  %v294_v41 = vpop.f32.mrf.mxu3 }
  0xb8   :  { %v476_v42 = vmax.f32 %v412_v38, 0.0  ;;  %v492_v43 = vmax.f32 %v428_v39, 0.0  ;;  %v376_v44 = vmul.f32 %v801_v16, %v246_v40  ;;  %v392_v45 = vmul.f32 %v801_v16, %v294_v41 }
  0xba   :  { %540 = vst [vmem:[#allocation7 + $0x8] sm:$0xff] %v476_v42  ;;  %v444_v46 = vadd.f32 %v806_v17, %v376_v44  ;;  %v460_v47 = vadd.f32 %v806_v17, %v392_v45 }
  0xbb   :  { %556 = vst [vmem:[#allocation7 + $0x88] sm:$0xff] %v492_v43  ;;  %v153_v48 = vpop.f32.mrf.mxu0  ;;  %v201_v49 = vpop.f32.mrf.mxu1 }
  0xbc   :  { %v508_v50 = vmax.f32 %v444_v46, 0.0  ;;  %v524_v51 = vmax.f32 %v460_v47, 0.0  ;;  %v345_v52 = vmul.f32 %v801_v16, %v153_v48  ;;  %v361_v53 = vmul.f32 %v801_v16, %v201_v49 }
  0xbe   :  { %572 = vst [vmem:[#allocation7 + $0x108] sm:$0xff] %v508_v50  ;;  %v413_v54 = vadd.f32 %v806_v17, %v345_v52  ;;  %v429_v55 = vadd.f32 %v806_v17, %v361_v53 }
  0xbf   :  { %588 = vst [vmem:[#allocation7 + $0x188] sm:$0xff] %v524_v51  ;;  %v249_v56 = vpop.f32.mrf.mxu2  ;;  %v297_v57 = vpop.f32.mrf.mxu3 }
  0xc0   :  { %v477_v58 = vmax.f32 %v413_v54, 0.0  ;;  %v493_v59 = vmax.f32 %v429_v55, 0.0  ;;  %v377_v60 = vmul.f32 %v801_v16, %v249_v56  ;;  %v393_v61 = vmul.f32 %v801_v16, %v297_v57 }
  0xc2   :  { %541 = vst [vmem:[#allocation7 + $0x10] sm:$0xff] %v477_v58  ;;  %v445_v62 = vadd.f32 %v806_v17, %v377_v60  ;;  %v461_v63 = vadd.f32 %v806_v17, %v393_v61 }
  0xc3   :  { %557 = vst [vmem:[#allocation7 + $0x90] sm:$0xff] %v493_v59  ;;  %v156_v0 = vpop.f32.mrf.mxu0  ;;  %v204_v1 = vpop.f32.mrf.mxu1 }
  0xc4   :  { %v509_v2 = vmax.f32 %v445_v62, 0.0  ;;  %v525_v3 = vmax.f32 %v461_v63, 0.0  ;;  %v346_v4 = vmul.f32 %v801_v16, %v156_v0  ;;  %v362_v5 = vmul.f32 %v801_v16, %v204_v1 }
  0xc6   :  { %573 = vst [vmem:[#allocation7 + $0x110] sm:$0xff] %v509_v2  ;;  %v414_v6 = vadd.f32 %v806_v17, %v346_v4  ;;  %v430_v7 = vadd.f32 %v806_v17, %v362_v5 }
  0xc7   :  { %589 = vst [vmem:[#allocation7 + $0x190] sm:$0xff] %v525_v3  ;;  %v252_v8 = vpop.f32.mrf.mxu2  ;;  %v300_v9 = vpop.f32.mrf.mxu3 }
  0xc8   :  { %v478_v10 = vmax.f32 %v414_v6, 0.0  ;;  %v494_v11 = vmax.f32 %v430_v7, 0.0  ;;  %v378_v12 = vmul.f32 %v801_v16, %v252_v8  ;;  %v394_v13 = vmul.f32 %v801_v16, %v300_v9 }
  0xca   :  { %542 = vst [vmem:[#allocation7 + $0x18] sm:$0xff] %v478_v10  ;;  %v446_v14 = vadd.f32 %v806_v17, %v378_v12  ;;  %v462_v15 = vadd.f32 %v806_v17, %v394_v13 }
  0xcb   :  { %558 = vst [vmem:[#allocation7 + $0x98] sm:$0xff] %v494_v11  ;;  %v159_v18 = vpop.f32.mrf.mxu0  ;;  %v207_v19 = vpop.f32.mrf.mxu1 }
  0xcc   :  { %v510_v20 = vmax.f32 %v446_v14, 0.0  ;;  %v526_v21 = vmax.f32 %v462_v15, 0.0  ;;  %v347_v22 = vmul.f32 %v801_v16, %v159_v18  ;;  %v363_v23 = vmul.f32 %v801_v16, %v207_v19 }
  0xce   :  { %574 = vst [vmem:[#allocation7 + $0x118] sm:$0xff] %v510_v20  ;;  %v415_v24 = vadd.f32 %v806_v17, %v347_v22  ;;  %v431_v25 = vadd.f32 %v806_v17, %v363_v23 }
  0xcf   :  { %590 = vst [vmem:[#allocation7 + $0x198] sm:$0xff] %v526_v21  ;;  %v255_v26 = vpop.f32.mrf.mxu2  ;;  %v303_v27 = vpop.f32.mrf.mxu3 }
  0xd0   :  { %v479_v28 = vmax.f32 %v415_v24, 0.0  ;;  %v495_v29 = vmax.f32 %v431_v25, 0.0  ;;  %v379_v30 = vmul.f32 %v801_v16, %v255_v26  ;;  %v395_v31 = vmul.f32 %v801_v16, %v303_v27 }
  0xd2   :  { %543 = vst [vmem:[#allocation7 + $0x20] sm:$0xff] %v479_v28  ;;  %v447_v32 = vadd.f32 %v806_v17, %v379_v30  ;;  %v463_v33 = vadd.f32 %v806_v17, %v395_v31 }
  0xd3   :  { %559 = vst [vmem:[#allocation7 + $0xa0] sm:$0xff] %v495_v29  ;;  %v162_v34 = vpop.f32.mrf.mxu0  ;;  %v210_v35 = vpop.f32.mrf.mxu1 }
  0xd4   :  { %v511_v36 = vmax.f32 %v447_v32, 0.0  ;;  %v527_v37 = vmax.f32 %v463_v33, 0.0  ;;  %v348_v38 = vmul.f32 %v801_v16, %v162_v34  ;;  %v364_v39 = vmul.f32 %v801_v16, %v210_v35 }
  0xd6   :  { %575 = vst [vmem:[#allocation7 + $0x120] sm:$0xff] %v511_v36  ;;  %v416_v40 = vadd.f32 %v806_v17, %v348_v38  ;;  %v432_v41 = vadd.f32 %v806_v17, %v364_v39 }
  0xd7   :  { %591 = vst [vmem:[#allocation7 + $0x1a0] sm:$0xff] %v527_v37  ;;  %v258_v42 = vpop.f32.mrf.mxu2  ;;  %v306_v43 = vpop.f32.mrf.mxu3 }
  0xd8   :  { %v480_v44 = vmax.f32 %v416_v40, 0.0  ;;  %v496_v45 = vmax.f32 %v432_v41, 0.0  ;;  %v380_v46 = vmul.f32 %v801_v16, %v258_v42  ;;  %v396_v47 = vmul.f32 %v801_v16, %v306_v43 }
  0xda   :  { %544 = vst [vmem:[#allocation7 + $0x28] sm:$0xff] %v480_v44  ;;  %v448_v48 = vadd.f32 %v806_v17, %v380_v46  ;;  %v464_v49 = vadd.f32 %v806_v17, %v396_v47 }
  0xdb   :  { %560 = vst [vmem:[#allocation7 + $0xa8] sm:$0xff] %v496_v45  ;;  %v165_v50 = vpop.f32.mrf.mxu0  ;;  %v213_v51 = vpop.f32.mrf.mxu1 }
  0xdc   :  { %v512_v52 = vmax.f32 %v448_v48, 0.0  ;;  %v528_v53 = vmax.f32 %v464_v49, 0.0  ;;  %v349_v54 = vmul.f32 %v801_v16, %v165_v50  ;;  %v365_v55 = vmul.f32 %v801_v16, %v213_v51 }
  0xde   :  { %576 = vst [vmem:[#allocation7 + $0x128] sm:$0xff] %v512_v52  ;;  %v417_v56 = vadd.f32 %v806_v17, %v349_v54  ;;  %v433_v57 = vadd.f32 %v806_v17, %v365_v55 }
  0xdf   :  { %592 = vst [vmem:[#allocation7 + $0x1a8] sm:$0xff] %v528_v53  ;;  %v261_v58 = vpop.f32.mrf.mxu2  ;;  %v309_v59 = vpop.f32.mrf.mxu3 }
  0xe0   :  { %v481_v60 = vmax.f32 %v417_v56, 0.0  ;;  %v497_v61 = vmax.f32 %v433_v57, 0.0  ;;  %v381_v62 = vmul.f32 %v801_v16, %v261_v58  ;;  %v397_v63 = vmul.f32 %v801_v16, %v309_v59 }
  0xe2   :  { %545 = vst [vmem:[#allocation7 + $0x30] sm:$0xff] %v481_v60  ;;  %v449_v0 = vadd.f32 %v806_v17, %v381_v62  ;;  %v465_v1 = vadd.f32 %v806_v17, %v397_v63 }
  0xe3   :  { %561 = vst [vmem:[#allocation7 + $0xb0] sm:$0xff] %v497_v61  ;;  %v168_v2 = vpop.f32.mrf.mxu0  ;;  %v216_v3 = vpop.f32.mrf.mxu1 }
  0xe4   :  { %v513_v4 = vmax.f32 %v449_v0, 0.0  ;;  %v529_v5 = vmax.f32 %v465_v1, 0.0  ;;  %v350_v6 = vmul.f32 %v801_v16, %v168_v2  ;;  %v366_v7 = vmul.f32 %v801_v16, %v216_v3 }
  0xe6   :  { %577 = vst [vmem:[#allocation7 + $0x130] sm:$0xff] %v513_v4  ;;  %v418_v8 = vadd.f32 %v806_v17, %v350_v6  ;;  %v434_v9 = vadd.f32 %v806_v17, %v366_v7 }
  0xe7   :  { %593 = vst [vmem:[#allocation7 + $0x1b0] sm:$0xff] %v529_v5  ;;  %v264_v10 = vpop.f32.mrf.mxu2  ;;  %v312_v11 = vpop.f32.mrf.mxu3 }
  0xe8   :  { %v482_v12 = vmax.f32 %v418_v8, 0.0  ;;  %v498_v13 = vmax.f32 %v434_v9, 0.0  ;;  %v382_v14 = vmul.f32 %v801_v16, %v264_v10  ;;  %v398_v15 = vmul.f32 %v801_v16, %v312_v11 }
  0xea   :  { %546 = vst [vmem:[#allocation7 + $0x38] sm:$0xff] %v482_v12  ;;  %v450_v18 = vadd.f32 %v806_v17, %v382_v14  ;;  %v466_v19 = vadd.f32 %v806_v17, %v398_v15 }
  0xeb   :  { %562 = vst [vmem:[#allocation7 + $0xb8] sm:$0xff] %v498_v13  ;;  %v171_v20 = vpop.f32.mrf.mxu0  ;;  %v219_v21 = vpop.f32.mrf.mxu1 }
  0xec   :  { %v514_v22 = vmax.f32 %v450_v18, 0.0  ;;  %v530_v23 = vmax.f32 %v466_v19, 0.0  ;;  %v351_v24 = vmul.f32 %v801_v16, %v171_v20  ;;  %v367_v25 = vmul.f32 %v801_v16, %v219_v21 }
  0xee   :  { %578 = vst [vmem:[#allocation7 + $0x138] sm:$0xff] %v514_v22  ;;  %v419_v26 = vadd.f32 %v806_v17, %v351_v24  ;;  %v435_v27 = vadd.f32 %v806_v17, %v367_v25 }
  0xef   :  { %594 = vst [vmem:[#allocation7 + $0x1b8] sm:$0xff] %v530_v23  ;;  %v267_v28 = vpop.f32.mrf.mxu2  ;;  %v315_v29 = vpop.f32.mrf.mxu3 }
  0xf0   :  { %v483_v30 = vmax.f32 %v419_v26, 0.0  ;;  %v499_v31 = vmax.f32 %v435_v27, 0.0  ;;  %v383_v32 = vmul.f32 %v801_v16, %v267_v28  ;;  %v399_v33 = vmul.f32 %v801_v16, %v315_v29 }
  0xf2   :  { %547 = vst [vmem:[#allocation7 + $0x40] sm:$0xff] %v483_v30  ;;  %v451_v34 = vadd.f32 %v806_v17, %v383_v32  ;;  %v467_v35 = vadd.f32 %v806_v17, %v399_v33 }
  0xf3   :  { %563 = vst [vmem:[#allocation7 + $0xc0] sm:$0xff] %v499_v31  ;;  %v174_v36 = vpop.f32.mrf.mxu0  ;;  %v222_v37 = vpop.f32.mrf.mxu1 }
  0xf4   :  { %v515_v38 = vmax.f32 %v451_v34, 0.0  ;;  %v531_v39 = vmax.f32 %v467_v35, 0.0  ;;  %v352_v40 = vmul.f32 %v801_v16, %v174_v36  ;;  %v368_v41 = vmul.f32 %v801_v16, %v222_v37 }
  0xf6   :  { %579 = vst [vmem:[#allocation7 + $0x140] sm:$0xff] %v515_v38  ;;  %v420_v42 = vadd.f32 %v806_v17, %v352_v40  ;;  %v436_v43 = vadd.f32 %v806_v17, %v368_v41 }
  0xf7   :  { %595 = vst [vmem:[#allocation7 + $0x1c0] sm:$0xff] %v531_v39  ;;  %v270_v44 = vpop.f32.mrf.mxu2  ;;  %v318_v45 = vpop.f32.mrf.mxu3 }
  0xf8   :  { %v484_v46 = vmax.f32 %v420_v42, 0.0  ;;  %v500_v47 = vmax.f32 %v436_v43, 0.0  ;;  %v384_v48 = vmul.f32 %v801_v16, %v270_v44  ;;  %v400_v49 = vmul.f32 %v801_v16, %v318_v45 }
  0xfa   :  { %548 = vst [vmem:[#allocation7 + $0x48] sm:$0xff] %v484_v46  ;;  %v452_v50 = vadd.f32 %v806_v17, %v384_v48  ;;  %v468_v51 = vadd.f32 %v806_v17, %v400_v49 }
  0xfb   :  { %564 = vst [vmem:[#allocation7 + $0xc8] sm:$0xff] %v500_v47  ;;  %v177_v52 = vpop.f32.mrf.mxu0  ;;  %v225_v53 = vpop.f32.mrf.mxu1 }
  0xfc   :  { %v516_v54 = vmax.f32 %v452_v50, 0.0  ;;  %v532_v55 = vmax.f32 %v468_v51, 0.0  ;;  %v353_v56 = vmul.f32 %v801_v16, %v177_v52  ;;  %v369_v57 = vmul.f32 %v801_v16, %v225_v53 }
  0xfe   :  { %580 = vst [vmem:[#allocation7 + $0x148] sm:$0xff] %v516_v54  ;;  %v421_v58 = vadd.f32 %v806_v17, %v353_v56  ;;  %v437_v59 = vadd.f32 %v806_v17, %v369_v57 }
  0xff   :  { %596 = vst [vmem:[#allocation7 + $0x1c8] sm:$0xff] %v532_v55  ;;  %v273_v60 = vpop.f32.mrf.mxu2  ;;  %v321_v61 = vpop.f32.mrf.mxu3 }
 0x100   :  { %v485_v62 = vmax.f32 %v421_v58, 0.0  ;;  %v501_v63 = vmax.f32 %v437_v59, 0.0  ;;  %v385_v0 = vmul.f32 %v801_v16, %v273_v60  ;;  %v401_v1 = vmul.f32 %v801_v16, %v321_v61 }
 0x102   :  { %549 = vst [vmem:[#allocation7 + $0x50] sm:$0xff] %v485_v62  ;;  %v453_v2 = vadd.f32 %v806_v17, %v385_v0  ;;  %v469_v3 = vadd.f32 %v806_v17, %v401_v1 }
 0x103   :  { %565 = vst [vmem:[#allocation7 + $0xd0] sm:$0xff] %v501_v63  ;;  %v180_v4 = vpop.f32.mrf.mxu0  ;;  %v228_v5 = vpop.f32.mrf.mxu1 }
 0x104   :  { %v517_v6 = vmax.f32 %v453_v2, 0.0  ;;  %v533_v7 = vmax.f32 %v469_v3, 0.0  ;;  %v354_v8 = vmul.f32 %v801_v16, %v180_v4  ;;  %v370_v9 = vmul.f32 %v801_v16, %v228_v5 }
 0x106   :  { %581 = vst [vmem:[#allocation7 + $0x150] sm:$0xff] %v517_v6  ;;  %v422_v10 = vadd.f32 %v806_v17, %v354_v8  ;;  %v438_v11 = vadd.f32 %v806_v17, %v370_v9 }
 0x107   :  { %597 = vst [vmem:[#allocation7 + $0x1d0] sm:$0xff] %v533_v7  ;;  %v276_v12 = vpop.f32.mrf.mxu2  ;;  %v324_v13 = vpop.f32.mrf.mxu3 }
 0x108   :  { %v486_v14 = vmax.f32 %v422_v10, 0.0  ;;  %v502_v15 = vmax.f32 %v438_v11, 0.0  ;;  %v386_v18 = vmul.f32 %v801_v16, %v276_v12  ;;  %v402_v19 = vmul.f32 %v801_v16, %v324_v13 }
 0x10a   :  { %550 = vst [vmem:[#allocation7 + $0x58] sm:$0xff] %v486_v14  ;;  %v454_v20 = vadd.f32 %v806_v17, %v386_v18  ;;  %v470_v21 = vadd.f32 %v806_v17, %v402_v19 }
 0x10b   :  { %566 = vst [vmem:[#allocation7 + $0xd8] sm:$0xff] %v502_v15  ;;  %v183_v22 = vpop.f32.mrf.mxu0  ;;  %v231_v23 = vpop.f32.mrf.mxu1 }
 0x10c   :  { %v518_v24 = vmax.f32 %v454_v20, 0.0  ;;  %v534_v25 = vmax.f32 %v470_v21, 0.0  ;;  %v355_v26 = vmul.f32 %v801_v16, %v183_v22  ;;  %v371_v27 = vmul.f32 %v801_v16, %v231_v23 }
 0x10e   :  { %582 = vst [vmem:[#allocation7 + $0x158] sm:$0xff] %v518_v24  ;;  %v423_v28 = vadd.f32 %v806_v17, %v355_v26  ;;  %v439_v29 = vadd.f32 %v806_v17, %v371_v27 }
 0x10f   :  { %598 = vst [vmem:[#allocation7 + $0x1d8] sm:$0xff] %v534_v25  ;;  %v279_v30 = vpop.f32.mrf.mxu2  ;;  %v327_v31 = vpop.f32.mrf.mxu3 }
 0x110   :  { %v487_v32 = vmax.f32 %v423_v28, 0.0  ;;  %v503_v33 = vmax.f32 %v439_v29, 0.0  ;;  %v387_v34 = vmul.f32 %v801_v16, %v279_v30  ;;  %v403_v35 = vmul.f32 %v801_v16, %v327_v31 }
 0x112   :  { %551 = vst [vmem:[#allocation7 + $0x60] sm:$0xff] %v487_v32  ;;  %v455_v36 = vadd.f32 %v806_v17, %v387_v34  ;;  %v471_v37 = vadd.f32 %v806_v17, %v403_v35 }
 0x113   :  { %567 = vst [vmem:[#allocation7 + $0xe0] sm:$0xff] %v503_v33  ;;  %v186_v38 = vpop.f32.mrf.mxu0  ;;  %v234_v39 = vpop.f32.mrf.mxu1 }
 0x114   :  { %v519_v40 = vmax.f32 %v455_v36, 0.0  ;;  %v535_v41 = vmax.f32 %v471_v37, 0.0  ;;  %v356_v42 = vmul.f32 %v801_v16, %v186_v38  ;;  %v372_v43 = vmul.f32 %v801_v16, %v234_v39 }
 0x116   :  { %583 = vst [vmem:[#allocation7 + $0x160] sm:$0xff] %v519_v40  ;;  %v424_v44 = vadd.f32 %v806_v17, %v356_v42  ;;  %v440_v45 = vadd.f32 %v806_v17, %v372_v43 }
 0x117   :  { %599 = vst [vmem:[#allocation7 + $0x1e0] sm:$0xff] %v535_v41  ;;  %v282_v46 = vpop.f32.mrf.mxu2  ;;  %v330_v47 = vpop.f32.mrf.mxu3 }
 0x118   :  { %v488_v48 = vmax.f32 %v424_v44, 0.0  ;;  %v504_v49 = vmax.f32 %v440_v45, 0.0  ;;  %v388_v50 = vmul.f32 %v801_v16, %v282_v46  ;;  %v404_v51 = vmul.f32 %v801_v16, %v330_v47 }
 0x11a   :  { %552 = vst [vmem:[#allocation7 + $0x68] sm:$0xff] %v488_v48  ;;  %v456_v52 = vadd.f32 %v806_v17, %v388_v50  ;;  %v472_v53 = vadd.f32 %v806_v17, %v404_v51 }
 0x11b   :  { %568 = vst [vmem:[#allocation7 + $0xe8] sm:$0xff] %v504_v49  ;;  %v189_v54 = vpop.f32.mrf.mxu0  ;;  %v237_v55 = vpop.f32.mrf.mxu1 }
 0x11c   :  { %v520_v56 = vmax.f32 %v456_v52, 0.0  ;;  %v536_v57 = vmax.f32 %v472_v53, 0.0  ;;  %v357_v58 = vmul.f32 %v801_v16, %v189_v54  ;;  %v373_v59 = vmul.f32 %v801_v16, %v237_v55 }
 0x11e   :  { %584 = vst [vmem:[#allocation7 + $0x168] sm:$0xff] %v520_v56  ;;  %v425_v60 = vadd.f32 %v806_v17, %v357_v58  ;;  %v441_v61 = vadd.f32 %v806_v17, %v373_v59 }
 0x11f   :  { %600 = vst [vmem:[#allocation7 + $0x1e8] sm:$0xff] %v536_v57  ;;  %v285_v62 = vpop.f32.mrf.mxu2  ;;  %v333_v63 = vpop.f32.mrf.mxu3 }
 0x120   :  { %v489_v0 = vmax.f32 %v425_v60, 0.0  ;;  %v505_v1 = vmax.f32 %v441_v61, 0.0  ;;  %v389_v2 = vmul.f32 %v801_v16, %v285_v62  ;;  %v405_v3 = vmul.f32 %v801_v16, %v333_v63 }
 0x122   :  { %553 = vst [vmem:[#allocation7 + $0x70] sm:$0xff] %v489_v0  ;;  %v457_v4 = vadd.f32 %v806_v17, %v389_v2  ;;  %v473_v5 = vadd.f32 %v806_v17, %v405_v3 }
 0x123   :  { %569 = vst [vmem:[#allocation7 + $0xf0] sm:$0xff] %v505_v1  ;;  %v192_v6 = vpop.f32.mrf.mxu0  ;;  %v240_v7 = vpop.f32.mrf.mxu1 }
 0x124   :  { %v521_v8 = vmax.f32 %v457_v4, 0.0  ;;  %v537_v9 = vmax.f32 %v473_v5, 0.0  ;;  %v358_v10 = vmul.f32 %v801_v16, %v192_v6  ;;  %v374_v11 = vmul.f32 %v801_v16, %v240_v7 }
 0x126   :  { %585 = vst [vmem:[#allocation7 + $0x170] sm:$0xff] %v521_v8  ;;  %v426_v12 = vadd.f32 %v806_v17, %v358_v10  ;;  %v442_v13 = vadd.f32 %v806_v17, %v374_v11 }
 0x127   :  { %601 = vst [vmem:[#allocation7 + $0x1f0] sm:$0xff] %v537_v9  ;;  %v288_v14 = vpop.f32.mrf.mxu2  ;;  %v336_v15 = vpop.f32.mrf.mxu3 }
 0x128   :  { %v490_v18 = vmax.f32 %v426_v12, 0.0  ;;  %v506_v19 = vmax.f32 %v442_v13, 0.0  ;;  %v390_v20 = vmul.f32 %v801_v16, %v288_v14  ;;  %v406_v21 = vmul.f32 %v801_v16, %v336_v15 }
 0x12a   :  { %554 = vst [vmem:[#allocation7 + $0x78] sm:$0xff] %v490_v18  ;;  %v458_v22 = vadd.f32 %v806_v17, %v390_v20  ;;  %v474_v23 = vadd.f32 %v806_v17, %v406_v21 }
 0x12b   :  { %570 = vst [vmem:[#allocation7 + $0xf8] sm:$0xff] %v506_v19 }
 0x12c   :  { %v522_v24 = vmax.f32 %v458_v22, 0.0  ;;  %v538_v25 = vmax.f32 %v474_v23, 0.0 }
 0x12e   :  { %586 = vst [vmem:[#allocation7 + $0x178] sm:$0xff] %v522_v24 }
 0x12f   :  { %602 = vst [vmem:[#allocation7 + $0x1f8] sm:$0xff] %v538_v25 }
 0x130   :  { %615 = dma.vmem_to_hbm [thread:$0]  %s608_s3, 8192, %s610_s5, [#allocation4], %s757_s23, %s757_s23, %s758_s24  }
 0x131   :  { %754 = dma.done.wait [#allocation4], 8192  }
 0x132   :  { %755 = vsyncadd [#allocation4], 4294959104 }
 0x133   :  { %620 = vsyncpa [#allocation3], 1 }
 0x134   :  { %621 = vsyncpa [#allocation6], 1 }
 0x135   :  { %622 = vsyncpa [#allocation4], 1 }

</bundles_post_ra>
